<compile_context>
chip_gen: v5e
topology: v5e:2x2
jax: 0.10.0
libtpu: 0.0.40
codegen_flags: <defaults>
</compile_context>

<pallas_src>
import numpy as np

import jax
import jax.numpy as jnp
from jax.experimental import pallas as pl
from jax.experimental.pallas import tpu as pltpu


# ---------------------------------------------------------------------------
# Kernel: one fused GCN layer row-tile:  out = relu(A_tile @ XW + b)
#   blk_idx_ref / blk_cnt_ref are scalar-prefetched SMEM refs describing the
#   nonzero adjacency blocks per row tile (data-dependent index_map).
# ---------------------------------------------------------------------------
def gcn_layer_kernel(blk_idx_ref, blk_cnt_ref, a_ref, xw_ref, b_ref, o_ref):
    i = pl.program_id(0)
    k = pl.program_id(1)

    @pl.when(k == 0)
    def _():
        o_ref[...] = jnp.zeros_like(o_ref)

    # Only accumulate real (nonzero) adjacency blocks of this row tile;
    # padded k slots skip the MXU work.
    @pl.when(k < blk_cnt_ref[i])
    def _():
        o_ref[...] += jnp.dot(a_ref[...], xw_ref[...],
                              preferred_element_type=jnp.float32)

    @pl.when(k == pl.num_programs(1) - 1)
    def _():
        o_ref[...] = jnp.maximum(o_ref[...] + b_ref[...], 0.0)


def gcn_layer(adj_bf16, xw_bf16, bias, blk_idx, blk_cnt, max_nnz, *, tm, tk):
    """One GCNConv + ReLU on padded, lane-dense operands (A and XW in bf16)."""
    n_pad = adj_bf16.shape[0]
    f_out = xw_bf16.shape[1]
    assert n_pad % tm == 0 and n_pad % tk == 0 and f_out % 128 == 0

    return pl.pallas_call(
        gcn_layer_kernel,
        out_shape=jax.ShapeDtypeStruct((n_pad, f_out), jnp.float32),
        grid_spec=pltpu.PrefetchScalarGridSpec(
            num_scalar_prefetch=2,
            grid=(n_pad // tm, max_nnz),                 # reduction axis last
            in_specs=[
                # A tile: data-dependent k-block index (skips empty blocks).
                pl.BlockSpec((tm, tk), lambda i, k, bidx, cnt: (i, bidx[i, k])),
                # XW tile: the matching row block of the pre-transformed feats.
                pl.BlockSpec((tk, f_out), lambda i, k, bidx, cnt: (bidx[i, k], 0)),
                # bias: invariant, fetched once.
                pl.BlockSpec((1, f_out), lambda i, k, bidx, cnt: (0, 0)),
            ],
            # Output block index constant over k -> VMEM-resident accumulator.
            out_specs=pl.BlockSpec((tm, f_out), lambda i, k, bidx, cnt: (i, 0)),
        ),
        compiler_params=pltpu.CompilerParams(
            dimension_semantics=("parallel", "arbitrary")),
    )(blk_idx, blk_cnt, adj_bf16, xw_bf16, bias)


# ---------------------------------------------------------------------------
# Wrapper helpers
# ---------------------------------------------------------------------------
def _round_up(v, m):
    return (v + m - 1) // m * m


def normalized_adjacency(edge_index, num_nodes):
    """A_hat = D^-1/2 (A + I) D^-1/2, matching PyG gcn_norm semantics."""
    src, dst = edge_index[0], edge_index[1]
    # add_remaining_self_loops: drop existing self loops, add weight-1 loops.
    ew = jnp.where(src == dst, 0.0, 1.0).astype(jnp.float32)
    a = jnp.zeros((num_nodes, num_nodes), jnp.float32).at[dst, src].add(ew)
    a = a + jnp.eye(num_nodes, dtype=jnp.float32)
    deg = a.sum(axis=1)                                    # in-degree incl. self loop
    dis = jnp.where(deg > 0.0, jax.lax.rsqrt(deg), 0.0)
    return a * dis[:, None] * dis[None, :]


def _block_structure(adj_p_f32, tm, tk):
    """Per-row-tile compacted list of nonzero (tm, tk) adjacency blocks.

    Computed eagerly on the host (gcn_forward is not jitted); real graph
    adjacencies are highly block-sparse so this shrinks the reduction grid.
    """
    a = np.asarray(jax.device_get(adj_p_f32))
    nb_i, nb_k = a.shape[0] // tm, a.shape[1] // tk
    mask = (a != 0.0).reshape(nb_i, tm, nb_k, tk).any(axis=(1, 3))
    counts = mask.sum(axis=1).astype(np.int32)
    max_nnz = max(int(counts.max()), 1)
    blk_idx = np.zeros((nb_i, max_nnz), np.int32)
    for i in range(nb_i):
        nz = np.nonzero(mask[i])[0].astype(np.int32)
        blk_idx[i, : nz.size] = nz
    return jnp.asarray(blk_idx), jnp.asarray(counts), max_nnz


# ---------------------------------------------------------------------------
# Forward: dense normalized adjacency + padding + two fused layers
# ---------------------------------------------------------------------------
def gcn_forward(x, edge_index, params, *, max_tile=1024):
    n = x.shape[0]
    h_feats = params["w1"].shape[1]
    n_cls = params["w2"].shape[1]

    # Built once per forward; for repeated inference hoist/cache this outside.
    adj = normalized_adjacency(edge_index, n)

    # --- tiling -------------------------------------------------------------
    tk = min(max_tile, _round_up(n, 128))         # lane dim of A: multiple of 128
    n_pad = _round_up(n, tk)
    tm = tk
    if n_pad // tm < 2:                           # >=2 row blocks -> use both v7x TCs
        tm = max(tk // 2, 8)                      # tk//2 is a multiple of 64

    h_p = _round_up(h_feats, 128)
    c_p = _round_up(n_cls, 128)

    # --- padded / bf16 operands ----------------------------------------------
    adj_p = jnp.zeros((n_pad, n_pad), jnp.float32).at[:n, :n].set(adj)
    blk_idx, blk_cnt, max_nnz = _block_structure(adj_p, tm, tk)
    adj_b = adj_p.astype(jnp.bfloat16)

    xf = x.astype(jnp.float32)
    w1 = params["w1"].astype(jnp.float32)
    b1 = params["b1"].astype(jnp.float32)
    w2 = params["w2"].astype(jnp.float32)
    b2 = params["b2"].astype(jnp.float32)

    # Layer 1: the tiny transform X @ W1 runs in the wrapper; the fused kernel
    # streams bf16 A / XW1 and computes relu(A @ XW1 + b1) on the MXU.
    xw1 = jnp.zeros((n_pad, h_p), jnp.float32).at[:n, :h_feats].set(xf @ w1)
    b1_p = jnp.zeros((1, h_p), jnp.float32).at[0, :h_feats].set(b1)
    h1 = gcn_layer(adj_b, xw1.astype(jnp.bfloat16), b1_p,
                   blk_idx, blk_cnt, max_nnz, tm=tm, tk=tk)

    # Layer 2. Padded feature cols of h1 are 0 and padded rows of w2_p are 0,
    # so the plain transform is exact; padded node rows of h1 hold relu(b1)
    # but adj_p's padded columns are zero, so they never contribute.
    w2_p = jnp.zeros((h_p, c_p), jnp.float32).at[:h_feats, :n_cls].set(w2)
    b2_p = jnp.zeros((1, c_p), jnp.float32).at[0, :n_cls].set(b2)
    xw2 = h1 @ w2_p
    h2 = gcn_layer(adj_b, xw2.astype(jnp.bfloat16), b2_p,
                   blk_idx, blk_cnt, max_nnz, tm=tm, tk=tk)

    # TODO(synk): F.dropout(x, training=self.training) is identity in eval
    # mode; training-mode random dropout masks are not implemented here.
    return h2[:n, :n_cls]


# ---------------------------------------------------------------------------
# Pure-JAX reference mirroring the PyTorch forward (eval mode) with the same
# bf16 quantization of the streamed operands as the kernel path.
# ---------------------------------------------------------------------------
def gcn_ref(x, edge_index, params):
    def q(v):  # bf16 stream quantization, f32 accumulate (as the MXU does)
        return v.astype(jnp.bfloat16).astype(jnp.float32)

    adj = q(normalized_adjacency(edge_index, x.shape[0]))
    h1 = jnp.maximum(adj @ q(x @ params["w1"]) + params["b1"], 0.0)
    h2 = jnp.maximum(adj @ q(h1 @ params["w2"]) + params["b2"], 0.0)
    return h2


if __name__ == "__main__":
    num_nodes, num_edges = 64, 256
    in_feats, h_feats, num_classes = 32, 32, 8

    key = jax.random.PRNGKey(0)
    kx, ke, k1, k2, k3, k4 = jax.random.split(key, 6)
    x = jax.random.normal(kx, (num_nodes, in_feats), jnp.float32)
    edge_index = jax.random.randint(ke, (2, num_edges), 0, num_nodes,
                                    dtype=jnp.int32)

    params = {
        "w1": jax.random.normal(k1, (in_feats, h_feats), jnp.float32)
              / (in_feats ** 0.5),
        "b1": jax.random.normal(k2, (h_feats,), jnp.float32) * 0.01,
        "w2": jax.random.normal(k3, (h_feats, num_classes), jnp.float32)
              / (h_feats ** 0.5),
        "b2": jax.random.normal(k4, (num_classes,), jnp.float32) * 0.01,
    }

    out = gcn_forward(x, edge_index, params)
    jax.block_until_ready(out)

    ref = gcn_ref(x, edge_index, params)
    assert out.shape == (num_nodes, num_classes)
    max_err = float(jnp.max(jnp.abs(out - ref)))
    assert jnp.allclose(out, ref, atol=2e-2, rtol=2e-2), max_err
    print("KERNEL_OK")
</pallas_src>

<mosaic_0001>
module attributes {stable_mosaic.version = 11 : i64} {
  func.func @gcn_layer_kernel(%arg0: i32, %arg1: i32, %arg2: memref<2x1xi32, #tpu.memory_space<smem>>, %arg3: memref<2xi32, #tpu.memory_space<smem>>, %arg4: memref<64x128xbf16, #tpu.memory_space<vmem>>, %arg5: memref<128x128xbf16, #tpu.memory_space<vmem>>, %arg6: memref<1x128xf32, #tpu.memory_space<vmem>>, %arg7: memref<64x128xf32, #tpu.memory_space<vmem>>) attributes {dimension_semantics = [#tpu.dimension_semantics<parallel>, #tpu.dimension_semantics<arbitrary>], iteration_bounds = array<i64: 2, 1>, scalar_prefetch = 2 : i64, scratch_operands = 0 : i64, tpu.core_type = #tpu.core_type<tc>, window_params = [{transform_indices = @transform_0, window_bounds = array<i64: 64, 128>}, {transform_indices = @transform_1, window_bounds = array<i64: 128, 128>}, {pipeline_mode = #tpu.pipeline_mode<synchronous>, transform_indices = @transform_2, window_bounds = array<i64: 1, 128>}, {transform_indices = @transform_3, window_bounds = array<i64: 64, 128>}]} {
    %c0_i32 = arith.constant 0 : i32
    %0 = arith.cmpi eq, %arg1, %c0_i32 : i32
    %1 = arith.extui %0 : i1 to i32
    %c0_i32_0 = arith.constant 0 : i32
    %2 = arith.cmpi ne, %1, %c0_i32_0 : i32
    scf.if %2 {
      %cst = arith.constant 0.000000e+00 : f32
      %11 = vector.broadcast %cst : f32 to vector<64x128xf32>
      %c0 = arith.constant 0 : index
      %c0_4 = arith.constant 0 : index
      %12 = vector.load %arg7[%c0, %c0_4] : memref<64x128xf32, #tpu.memory_space<vmem>>, vector<64x128xf32>
      tpu.vector_store %arg7[%c0, %c0_4], %11 {strides = array<i32>} : memref<64x128xf32, #tpu.memory_space<vmem>>, vector<64x128xf32>,
    } else {
    }
    %3 = arith.index_cast %arg0 : i32 to index
    %4 = memref.load %arg3[%3] : memref<2xi32, #tpu.memory_space<smem>>
    %5 = arith.cmpi slt, %arg1, %4 : i32
    %6 = arith.extui %5 : i1 to i32
    %c0_i32_1 = arith.constant 0 : i32
    %7 = arith.cmpi ne, %6, %c0_i32_1 : i32
    scf.if %7 {
      %c0 = arith.constant 0 : index
      %c0_4 = arith.constant 0 : index
      %11 = vector.load %arg7[%c0, %c0_4] : memref<64x128xf32, #tpu.memory_space<vmem>>, vector<64x128xf32>
      %c0_5 = arith.constant 0 : index
      %c0_6 = arith.constant 0 : index
      %12 = vector.load %arg4[%c0_5, %c0_6] : memref<64x128xbf16, #tpu.memory_space<vmem>>, vector<64x128xbf16>
      %c0_7 = arith.constant 0 : index
      %c0_8 = arith.constant 0 : index
      %13 = vector.load %arg5[%c0_7, %c0_8] : memref<128x128xbf16, #tpu.memory_space<vmem>>, vector<128x128xbf16>
      %cst = arith.constant dense<0.000000e+00> : vector<64x128xf32>
      %14 = tpu.matmul %12, %13, %cst {dimension_numbers = #tpu.dot_dimension_numbers<[1], [0], [0], [1], [0, 0, 1, 1], [], []>} : vector<64x128xbf16>, vector<128x128xbf16>, vector<64x128xf32> -> vector<64x128xf32>
      %15 = arith.addf %11, %14 : vector<64x128xf32>
      %c0_9 = arith.constant 0 : index
      %c0_10 = arith.constant 0 : index
      %16 = vector.load %arg7[%c0_9, %c0_10] : memref<64x128xf32, #tpu.memory_space<vmem>>, vector<64x128xf32>
      tpu.vector_store %arg7[%c0_9, %c0_10], %15 {strides = array<i32>} : memref<64x128xf32, #tpu.memory_space<vmem>>, vector<64x128xf32>,
    } else {
    }
    %c0_i32_2 = arith.constant 0 : i32
    %8 = arith.cmpi eq, %arg1, %c0_i32_2 : i32
    %9 = arith.extui %8 : i1 to i32
    %c0_i32_3 = arith.constant 0 : i32
    %10 = arith.cmpi ne, %9, %c0_i32_3 : i32
    scf.if %10 {
      %c0 = arith.constant 0 : index
      %c0_4 = arith.constant 0 : index
      %11 = vector.load %arg7[%c0, %c0_4] : memref<64x128xf32, #tpu.memory_space<vmem>>, vector<64x128xf32>
      %c0_5 = arith.constant 0 : index
      %c0_6 = arith.constant 0 : index
      %12 = vector.load %arg6[%c0_5, %c0_6] : memref<1x128xf32, #tpu.memory_space<vmem>>, vector<1x128xf32>
      %13 = vector.broadcast %12 : vector<1x128xf32> to vector<64x128xf32>
      %14 = arith.addf %11, %13 : vector<64x128xf32>
      %cst = arith.constant 0.000000e+00 : f32
      %15 = vector.broadcast %cst : f32 to vector<64x128xf32>
      %16 = arith.maximumf %14, %15 : vector<64x128xf32>
      %c0_7 = arith.constant 0 : index
      %c0_8 = arith.constant 0 : index
      %17 = vector.load %arg7[%c0_7, %c0_8] : memref<64x128xf32, #tpu.memory_space<vmem>>, vector<64x128xf32>
      tpu.vector_store %arg7[%c0_7, %c0_8], %16 {strides = array<i32>} : memref<64x128xf32, #tpu.memory_space<vmem>>, vector<64x128xf32>,
    } else {
    }
    return
  }
  func.func @transform_0(%arg0: i32, %arg1: i32, %arg2: memref<2x1xi32, #tpu.memory_space<smem>>, %arg3: memref<2xi32, #tpu.memory_space<smem>>) -> (i32, i32) {
    %0 = arith.index_cast %arg0 : i32 to index
    %1 = arith.index_cast %arg1 : i32 to index
    %2 = memref.load %arg2[%0, %1] : memref<2x1xi32, #tpu.memory_space<smem>>
    %c0_i32 = arith.constant 0 : i32
    return %arg0, %2 : i32, i32
  }
  func.func @transform_1(%arg0: i32, %arg1: i32, %arg2: memref<2x1xi32, #tpu.memory_space<smem>>, %arg3: memref<2xi32, #tpu.memory_space<smem>>) -> (i32, i32) {
    %0 = arith.index_cast %arg0 : i32 to index
    %1 = arith.index_cast %arg1 : i32 to index
    %2 = memref.load %arg2[%0, %1] : memref<2x1xi32, #tpu.memory_space<smem>>
    %c0_i32 = arith.constant 0 : i32
    %c0_i32_0 = arith.constant 0 : i32
    return %2, %c0_i32 : i32, i32
  }
  func.func @transform_2(%arg0: i32, %arg1: i32, %arg2: memref<2x1xi32, #tpu.memory_space<smem>>, %arg3: memref<2xi32, #tpu.memory_space<smem>>) -> (i32, i32) {
    %c0_i32 = arith.constant 0 : i32
    %c0_i32_0 = arith.constant 0 : i32
    %c0_i32_1 = arith.constant 0 : i32
    return %c0_i32, %c0_i32_0 : i32, i32
  }
  func.func @transform_3(%arg0: i32, %arg1: i32, %arg2: memref<2x1xi32, #tpu.memory_space<smem>>, %arg3: memref<2xi32, #tpu.memory_space<smem>>) -> (i32, i32) {
    %c0_i32 = arith.constant 0 : i32
    %c0_i32_0 = arith.constant 0 : i32
    return %arg0, %c0_i32 : i32, i32
  }
}

</mosaic_0001>

<bundles_post_ra>
// kernel: tpu_custom_call.1
= control target key start
LH: loop header
LB: loop body
LE: loop exit
PB: predicated region body
PF: predicated region fallthrough
CT: control target
= control target key end

     0   :  { %s1123_s24 = smov [#allocation3]   ;;  %s1124_s25 = smov [#allocation4]   ;;  %s1516_s0 = inlined_call_operand.vmem [shape: s32[2,1], index: 0, kind: input, shape index: {}]   ;;  %s1517_s2 = inlined_call_operand.hbm [shape: bf16[128,128], index: 2, kind: input, shape index: {}]   ;;  %s1518_s3 = inlined_call_operand.hbm [shape: bf16[128,128], index: 3, kind: input, shape index: {}]   ;;  %s1519_s4 = inlined_call_operand.vmem [shape: f32[1,128], index: 4, kind: input, shape index: {}]   ;;  %s1520_s5 = inlined_call_operand.hbm [shape: f32[128,128], index: 5, kind: output, shape index: {}]   ;;  %s1521_s1 = inlined_call_operand.vmem [shape: s32[2], index: 1, kind: input, shape index: {}]  }
   0x1   :  { %1534 = sst [smem:[#allocation29_spill]] %s1519_s4  ;;  %s11_s20 = sshll.u32 %s1516_s0, 4  ;;  %s12_s20 = int_to_ptr.vmem [resolvable:$true] %s11_s20 }
   0x2   :  { %1535 = sst [smem:[#allocation30_spill]] %s1520_s5  ;;  %s16_s23 = sshll.u32 %s1521_s1, 4  ;;  %s17_s23 = int_to_ptr.vmem [resolvable:$true] %s16_s23 }
   0x3   :  { %14 = dma.vmem_to_smem %s12_s20, 32, %s1123_s24, [#allocation2] }
   0x4   :  { %19 = dma.vmem_to_smem %s17_s23, 16, %s1124_s25, [#allocation2] }
   0x5   :  { %1061 = dma.done.wait [#allocation2], 48 }
   0x6   :  { %1062 = vsyncadd [#allocation2], 4294967248 }
   0x7   :  { %22 = sfence }
   0x8   :  { %23 = vsyncpa [#allocation6], 0 }
   0x9   :  { %25 = vsyncpa [#allocation6 + $0x1], 0 }
   0xa   :  { %26 = vsyncpa [#allocation9], 0 }
   0xb   :  { %28 = vsyncpa [#allocation9 + $0x1], 0 }
   0xc   :  { %29 = vsyncpa [#allocation7], 0 }
   0xd   :  { %31 = vsyncpa [#allocation7 + $0x1], 0  ;;  %s1166_s0 = smov 0   ;;  %s1168_s26 = smov 0  }
   0xe   :  { %s1170_s1 = smov 0   ;;  %s1172_s27 = smov 0  }
   0xf   :  { %s1174_s28 = smov 0   ;;  %s1176_s29 = smov 0  }
  0x10   :  { %s1178_s30 = smov 0   ;;  %s1180_s6 = smov 0  }
  0x11   :  { %s1182_s7 = smov 0   ;;  %s1184_s8 = smov 0  }
  0x12   :  { %s1186_s9 = smov 0   ;;  %s1188_s10 = smov 0  }
  0x13 LB: > { %1536 = sst [smem:[#allocation19_spill]] %s1077_s0  ;;  %s657_s11 = sadd.s32 4294967295, %s1121_s10   ;;  %s1121_s10 = sphi %s1188_s10, %s37_s10   ;;  %s1117_s9 = sphi %s1186_s9, %s1574_s9   ;;  %s1113_s8 = sphi %s1184_s8, %s1573_s8   ;;  %s1109_s7 = sphi %s1182_s7, %s1572_s7   ;;  %s1105_s6 = sphi %s1180_s6, %s1581_s6   ;;  %s1101_s30 = sphi %s1178_s30, %s1580_s30   ;;  %s1097_s29 = sphi %s1176_s29, %s1579_s29   ;;  %s1093_s28 = sphi %s1174_s28, %s1578_s28   ;;  %s1089_s27 = sphi %s1172_s27, %s1577_s27   ;;  %s1085_s1 = sphi %s1170_s1, %s1570_s1   ;;  %s1081_s26 = sphi %s1168_s26, %s1576_s26   ;;  %s1077_s0 = sphi %s1166_s0, %s1575_s0  }
  0x14   : > { %1537 = sst [smem:[#allocation20_spill]] %s1085_s1  ;;  %s658_s12 = sadd.s32 4294967294, %s1121_s10  }
  0x15   : > { %1538 = sst [smem:[#allocation21_spill]] %s1109_s7  ;;  %s49_s13 = sadd.s32 1, %s1117_s9 }
  0x16   : > { %1539 = sst [smem:[#allocation22_spill]] %s1117_s9  ;;  %s1228_s14 = sshll.u32 %s1117_s9, 7 }
  0x17   : > { %p51_p0 = scmp.ge.s32.totalorder %s49_s13, 2  ;;  %s60_s15 = sld [smem:[#allocation3 + %s1228_s14]] }
  0x18   : > { %s74_s16 = sadd.s32 1, %s1109_s7  ;;  %p81_p1 = scmp.ne.s32.totalorder %s1109_s7, %s1105_s6 }
  0x19   : > { %s1583_s13 = smov (%p51_p0, %s49_s13), 0  ;;  %p1533_p2 = scmp.eq.s32.totalorder %s1121_s10, 0 }
  0x1a   : > { %1540 = sst [smem:[#allocation23_spill]] %s1583_s13  ;;  %p87_p3 = scmp.ne.s32.totalorder %s1105_s6, %s1101_s30 }
  0x1b   : > { %s660_s17 = sshll.u32 %s1583_s13, 7  ;;  %s69_s18 = ssub.s32 %s1117_s9, %s1583_s13 }
  0x1c   : > { %s68_s19 = sld [smem:[#allocation3 + %s660_s17]]  ;;  %p1243_p4 = por %p1533_p2, %p81_p1 }
  0x1d   : > { %p1247_p5 = scmp.eq.s32.totalorder %s657_s11, 0  ;;  %s1252_s22 = sld [smem:[#allocation3 + %s1228_s14]] }
  0x1e   : > { %s1254_s23 = sld [smem:[#allocation3 + %s660_s17]]  ;;  %p161_p6 = scmp.eq.s32.totalorder %s69_s18, 0 }
  0x1f   : > { %p1258_p7 = por %p1247_p5, %p87_p3  ;;  %s163_s25 = sadd.s32 1, %s1085_s1 }
  0x20   : > { %s1264_s30 = scalar_select %p161_p6, %s1085_s1, %s163_s25  }
  0x21   : > { %p173_p8 = scmp.ne.s32.totalorder %s1085_s1, %s1081_s26  ;;  %p174_p9 = scmp.eq.s32.totalorder %s657_s11, 1 }
  0x22   : > { %1544 = sst [smem:[#allocation24_spill]] %s1264_s30  ;;  %s70_s13 = ssub.s32 %s60_s15, %s68_s19 }
  0x23   : > { %p179_p10 = scmp.ne.s32.totalorder %s1081_s26, %s1077_s0  ;;  %s71_s17 = sor.u32 %s70_s13, %s69_s18 }
  0x24   : > { %p1270_p11 = por %p174_p9, %p173_p8  ;;  %p72_p12 = scmp.eq.s32.totalorder %s71_s17, 0 }
  0x25   : > { %p180_p13 = scmp.eq.s32.totalorder %s658_s12, 1  ;;  %p1532_p1 = scmp.lt.s32.totalorder %s1121_s10, 2 }
  0x26   : > { %s1545_s5 = scalar_select %p1270_p11, 1, 0 }
  0x27   : > { %s1277_s25 = scalar_select %p72_p12, %s1109_s7, %s74_s16  }
  0x28   : > { %1546 = sst [smem:[#allocation25_spill]] %s1545_s5  ;;  %p1279_p3 = por %p180_p13, %p179_p10 }
  0x29   : > { %1547 = sst [smem:[#allocation26_spill]] %s1277_s25  ;;  %s203_s15 = sand.u32 1, %s1109_s7  }
  0x2a   : > { %s1548_s11 = scalar_select %p1279_p3, 1, 0 }
  0x2b   : > { %s665_s13 = sshll.u32 %s203_s15, 5  ;;  %s667_s18 = sshll.u32 %s1117_s9, 3 }
  0x2c   : > { %1549 = sst [smem:[#allocation27_spill]] %s1548_s11  ;;  %s207_s12 = scalar_lea.vmem [#allocation5], %s665_s13 }
  0x2d   : > { %s770_s19 = scalar_select %p1243_p4, [#allocation3], [#allocation11] }
  0x2e   : > { %s771_s17 = scalar_select %p1243_p4, %s1228_s14, 0 }
  0x2f   : > { %s1585_s19 = smov (!%p1532_p1, %s770_s19), [#allocation13]  ;;  %s1294_s16 = sshll.u32 %s207_s12, 4 }
  0x30   : > { %s1587_s17 = smov (!%p1532_p1, %s771_s17), 0  ;;  %1550 = sst [smem:[#allocation28_spill]] %s1294_s16 }
  0x31   : > { %p1300_p6 = pnand %p1532_p1, %p1243_p4  ;;  %s215_s9 = sld [smem:[%s1585_s19 + %s1587_s17]] }
  0x32   : > { %p673_p8 = scmp.ge.s32.totalorder %s1121_s10, 1  ;;  %p262_p9 = scmp.lt.s32.totalorder %s1121_s10, 3 }
  0x33   : > { %s113_s11 = ssub.s32 %s1252_s22, %s1254_s23  ;;  %s116_s19 = sadd.s32 1, %s1097_s29 }
  0x34   : > { %p1307_p10 = pnand %p673_p8, %p262_p9  ;;  %p1316_p4 = scmp.eq.s32.totalorder %s113_s11, 0 }
  0x35   : > { %s204_s17 = scalar_lea.sflag [#allocation6], %s203_s15  ;;  %p929_p13 = pneg %p1300_p6 }
  0x36   : > { %s932_s22 = scalar_lea.hbm %s1517_s2, 64 }
  0x37   : > { %s219_s30 = sadd.s32 %s667_s18, %s215_s9 }
  0x38   : > { %s668_s13 = sshll.u32 %s219_s30, 2 }
  0x39   : > { %s221_s20 = scalar_lea.hbm %s1517_s2, %s668_s13 }
  0x3a   : > { %s222_s0 = sshll.u32 %s221_s20, 4  ;;  %s223_s0 = int_to_ptr.hbm [resolvable:$true] %s222_s0 }
  0x3b   : > { %s925_s16 = sshra.s32 %s223_s0, 4  ;;  %s926_s16 = int_to_ptr.hbm [resolvable:$true] %s925_s16 }
  0x3c   : > { %s927_s4 = scalar_lea.hbm %s926_s16, 32  ;;  %p933_p0 = scmp.lt.s32.totalorder %s926_s16, %s1517_s2 }
  0x3d   : > { %p928_p12 = scmp.ne.s32.totalorder %s926_s16, %s927_s4  ;;  %p934_p1 = scmp.lt.s32.totalorder %s932_s22, %s927_s4 }
  0x3f   : > { %p930_p8 = pnand %p929_p13, %p928_p12  ;;  %p935_p2 = por %p934_p1, %p933_p0 }
  0x41   : > { %p931_p9 = pneg %p930_p8 }
  0x43   : > { %p936_p3 = pnand %p935_p2, %p931_p9 }
  0x45   : > { %939 = shalt.err (!%p936_p3)
}
  0x46   : > { %s1125_s11 = smov 64   ;;  %s1554_s15 = sld [smem:[#allocation28_spill]] }
  0x47   : > { %s1126_s4 = smov 4   ;;  %p123_p2 = scmp.ne.s32.totalorder %s1097_s29, %s1093_s28 }
  0x48   : > { %s1339_s16 = scalar_select %p1316_p4, %s1097_s29, %s116_s19  }
  0x49   : > { %p129_p0 = scmp.ne.s32.totalorder %s1093_s28, %s1089_s27  ;;  %s234_s13 = sand.u32 1, %s1097_s29  }
  0x4a   : > { %p1556_p1 = scmp.eq.s32.totalorder %s1121_s10, 0  ;;  %s669_s20 = sshll.u32 %s234_s13, 6 }
  0x4b   : > { %p1350_p12 = por %p129_p0, %p1247_p5  ;;  %p1558_p13 = scmp.lt.s32.totalorder %s1121_s10, 2 }
  0x4c   : > { %s1555_s18 = int_to_ptr.vmem [resolvable:$true] %s1554_s15  ;;  %p125_p3 = por %p123_p2, %p1556_p1 }
  0x4d   : > { %785 = dma.hbm_to_vmem [thread:$0]  (!%p1300_p6), %s223_s0, 512, %s1555_s18, %s204_s17, %s1125_s11, %s1125_s11, %s1126_s4  }
  0x4e   : > { %p1356_p8 = pnand %p1558_p13, %p125_p3  ;;  %s1589_s14 = smov (!%p125_p3, %s1228_s14), 0 }
  0x4f   : > { %s773_s0 = scalar_select %p125_p3, [#allocation3], [#allocation12] }
  0x50   : > { %p1560_p6 = pmov %p1558_p13  ;;  %s238_s27 = scalar_lea.vmem [#allocation8], %s669_s20 }
  0x51   : > { %s254_s21 = sshll.u32 %s238_s27, 4  ;;  %s235_s23 = scalar_lea.sflag [#allocation9], %s234_s13  ;;  %s255_s21 = int_to_ptr.vmem [resolvable:$true] %s254_s21 }
  0x52   : > { %s1591_s0 = smov (!%p1560_p6, %s773_s0), [#allocation14]  ;;  %p1561_p4 = pmov %p1560_p6 }
  0x53   : > { %p959_p9 = pneg %p1356_p8  ;;  %s962_s20 = scalar_lea.hbm %s1518_s3, 64 }
  0x54   : > { %s1593_s14 = smov (!%p1561_p4, %s1589_s14), 0 }
  0x55   : > { %s246_s5 = sld [smem:[%s1591_s0 + %s1593_s14]] }
  0x5b   : > { %s732_s19 = sshll.u32 %s246_s5, 6 }
  0x5c   : > { %s251_s1 = scalar_lea.hbm %s1518_s3, %s732_s19 }
  0x5d   : > { %s252_s22 = sshll.u32 %s251_s1, 4  ;;  %s253_s22 = int_to_ptr.hbm [resolvable:$true] %s252_s22 }
  0x5e   : > { %s955_s30 = sshra.s32 %s253_s22, 4  ;;  %s956_s30 = int_to_ptr.hbm [resolvable:$true] %s955_s30 }
  0x5f   : > { %s957_s15 = scalar_lea.hbm %s956_s30, 64  ;;  %p963_p1 = scmp.lt.s32.totalorder %s956_s30, %s1518_s3 }
  0x60   : > { %p958_p5 = scmp.ne.s32.totalorder %s956_s30, %s957_s15  ;;  %p964_p3 = scmp.lt.s32.totalorder %s962_s20, %s957_s15 }
  0x62   : > { %p960_p2 = pnand %p959_p9, %p958_p5  ;;  %p965_p13 = por %p964_p3, %p963_p1 }
  0x64   : > { %p961_p0 = pneg %p960_p2 }
  0x66   : > { %p966_p6 = pnand %p965_p13, %p961_p0 }
  0x68   : > { %969 = shalt.err (!%p966_p6)
}
  0x69   : > { %790 = dma.hbm_to_vmem [thread:$0]  (!%p1356_p8), %s253_s22, 1024, %s255_s21, %s235_s23, %s1125_s11, %s1125_s11, %s1126_s4  }
  0x6a   : > { %266 = sbr.rel (%p1307_p10) target bundleno = 328 (0x148), region = 32  ;;  %s268_s13 = sand.u32 (!%p1307_p10), 1, %s1105_s6  }
  0x6b   : > { %s674_s27 = sshll.u32 (!%p1307_p10), %s268_s13, 5  ;;  %s269_s19 = scalar_lea.sflag (!%p1307_p10), [#allocation6], %s268_s13 }
  0x6c   : > { %s1384_s17 = scalar_lea.vmem (!%p1307_p10), [#allocation5], %s674_s27 }
  0x6f   : > { %1064 = dma.done.wait (%p1258_p7), %s269_s19, 512  }
  0x70   : > { %1066 = vsyncadd (%p1258_p7), %s269_s19, 4294966784  ;;  %s278_s25 = sand.u32 1, %s1093_s28  }
  0x71   : > { %s675_s9 = sshll.u32 %s278_s25, 6  ;;  %s279_s11 = scalar_lea.sflag [#allocation9], %s278_s25 }
  0x72   : > { %s1391_s4 = scalar_lea.vmem [#allocation8], %s675_s9 }
  0x73   : > { %1068 = dma.done.wait (%p1350_p12), %s279_s11, 1024  }
  0x74   : > { %1070 = vsyncadd (%p1350_p12), %s279_s11, 4294966272  ;;  %s308_s7 = sand.u32 1, %s1081_s26   ;;  %s342_s21 = sld [smem:[#allocation4 + %s1113_s8]]  ;;  %v1127_v0 = vmov 0.0  }
  0x75   : > { %s676_s24 = sshll.u32 %s308_s7, 6 }
  0x76   : > { %s1401_s1 = scalar_lea.vmem [#allocation10], %s676_s24 }
  0x77   : > { %334 = vst [vmem:[%s1401_s1] sm:$0xff] %v1127_v0 }
  0x78   : > { %335 = vst [vmem:[%s1401_s1 + $0x8] sm:$0xff] %v1127_v0 }
  0x79   : > { %336 = vst [vmem:[%s1401_s1 + $0x10] sm:$0xff] %v1127_v0 }
  0x7a   : > { %337 = vst [vmem:[%s1401_s1 + $0x18] sm:$0xff] %v1127_v0  ;;  %p678_p7 = scmp.le.s32.totalorder %s342_s21, 0 }
  0x7b   : > { %338 = vst [vmem:[%s1401_s1 + $0x20] sm:$0xff] %v1127_v0 }
  0x7c   : > { %339 = vst [vmem:[%s1401_s1 + $0x28] sm:$0xff] %v1127_v0  ;;  %346 = sbr.rel (%p678_p7) target bundleno = 306 (0x132), region = 48 }
  0x7d   : > { %340 = vst [vmem:[%s1401_s1 + $0x30] sm:$0xff] %v1127_v0 }
  0x7e   : > { %341 = vst [vmem:[%s1401_s1 + $0x38] sm:$0xff] %v1127_v0 }
  0x81   : > { %v744_v1 = vld [vmem:[%s1391_s4 + $0x38] sm:$0xff]  ;;  %v743_v2 = vld [vmem:[%s1391_s4 + $0x30] sm:$0xff]  ;;  %v742_v3 = vld [vmem:[%s1391_s4 + $0x28] sm:$0xff] }
  0x82   : > { %451 = vmatpush.bf16.msra.mxu0 %v744_v1  ;;  %746 = vmatpush.bf16.msra.mxu1 %v744_v1  ;;  %v741_v4 = vld [vmem:[%s1391_s4 + $0x20] sm:$0xff]  ;;  %v740_v5 = vld [vmem:[%s1391_s4 + $0x18] sm:$0xff]  ;;  %v739_v6 = vld [vmem:[%s1391_s4 + $0x10] sm:$0xff] }
  0x83   : > { %747 = vmatpush.bf16.msra.mxu2 %v744_v1  ;;  %748 = vmatpush.bf16.msra.mxu3 %v744_v1  ;;  %v738_v7 = vld [vmem:[%s1391_s4 + $0x8] sm:$0xff]  ;;  %v737_v8 = vld [vmem:[%s1391_s4] sm:$0xff]  ;;  %v735_v11 = vld [vmem:[%s1384_s17 + $0x10] sm:$0xff] }
  0x84   : > { %v733_v9 = vld [vmem:[%s1384_s17] sm:$0xff]  ;;  %v734_v10 = vld [vmem:[%s1384_s17 + $0x8] sm:$0xff]  ;;  %v736_v12 = vld [vmem:[%s1384_s17 + $0x18] sm:$0xff] }
  0x85   : > { %v347_v13 = vld [vmem:[%s1401_s1] sm:$0xff]  ;;  %v349_v14 = vld [vmem:[%s1401_s1 + $0x10] sm:$0xff]  ;;  %v348_v21 = vld [vmem:[%s1401_s1 + $0x8] sm:$0xff] }
  0x86   : > { %452 = vmatpush.bf16.msra.mxu0 %v743_v2  ;;  %749 = vmatpush.bf16.msra.mxu1 %v743_v2  ;;  %v351_v19 = vld [vmem:[%s1401_s1 + $0x20] sm:$0xff]  ;;  %v353_v20 = vld [vmem:[%s1401_s1 + $0x30] sm:$0xff]  ;;  %v350_v22 = vld [vmem:[%s1401_s1 + $0x18] sm:$0xff] }
  0x87   : > { %750 = vmatpush.bf16.msra.mxu2 %v743_v2  ;;  %751 = vmatpush.bf16.msra.mxu3 %v743_v2  ;;  %v352_v31 = vld [vmem:[%s1401_s1 + $0x28] sm:$0xff]  ;;  %v354_v32 = vld [vmem:[%s1401_s1 + $0x38] sm:$0xff] }
  0x8a   : > { %453 = vmatpush.bf16.msra.mxu0 %v742_v3  ;;  %752 = vmatpush.bf16.msra.mxu1 %v742_v3 }
  0x8b   : > { %753 = vmatpush.bf16.msra.mxu2 %v742_v3  ;;  %754 = vmatpush.bf16.msra.mxu3 %v742_v3 }
  0x8e   : > { %454 = vmatpush.bf16.msra.mxu0 %v741_v4  ;;  %755 = vmatpush.bf16.msra.mxu1 %v741_v4 }
  0x8f   : > { %756 = vmatpush.bf16.msra.mxu2 %v741_v4  ;;  %757 = vmatpush.bf16.msra.mxu3 %v741_v4 }
  0x92   : > { %455 = vmatpush.bf16.msra.mxu0 %v740_v5  ;;  %758 = vmatpush.bf16.msra.mxu1 %v740_v5 }
  0x93   : > { %759 = vmatpush.bf16.msra.mxu2 %v740_v5  ;;  %760 = vmatpush.bf16.msra.mxu3 %v740_v5 }
  0x96   : > { %456 = vmatpush.bf16.msra.mxu0 %v739_v6  ;;  %761 = vmatpush.bf16.msra.mxu1 %v739_v6 }
  0x97   : > { %762 = vmatpush.bf16.msra.mxu2 %v739_v6  ;;  %763 = vmatpush.bf16.msra.mxu3 %v739_v6 }
  0x9a   : > { %457 = vmatpush.bf16.msra.mxu0 %v738_v7  ;;  %764 = vmatpush.bf16.msra.mxu1 %v738_v7 }
  0x9b   : > { %765 = vmatpush.bf16.msra.mxu2 %v738_v7  ;;  %766 = vmatpush.bf16.msra.mxu3 %v738_v7 }
  0x9e   : > { %458 = vmatpush.bf16.msra.mxu0 %v737_v8  ;;  %767 = vmatpush.bf16.msra.mxu1 %v737_v8 }
  0x9f   : > { %768 = vmatpush.bf16.msra.mxu2 %v737_v8  ;;  %769 = vmatpush.bf16.msra.mxu3 %v737_v8 }
  0xa1   : > { %459 = vmatmul.bf16.vlgmr.msra.gmra.mxu0 %v733_v9  ;;  %464 = vmatmul.bf16.vlgmr.msra.gmra.mxu1 %v734_v10 }
  0xa2   : > { %469 = vmatmul.bf16.vlgmr.msra.gmra.mxu2 %v735_v11  ;;  %474 = vmatmul.bf16.vlgmr.msra.gmra.mxu3 %v736_v12 }
 0x11e   : > { %v460_v15 = vpop.f32.mrf.mxu0  ;;  %v465_v16 = vpop.f32.mrf.mxu1 }
 0x11f   : > { %v480_v17 = vadd.f32 %v460_v15, %v347_v13  ;;  %v482_v18 = vadd.f32 %v465_v16, %v349_v14 }
 0x121   : > { %488 = vst [vmem:[%s1401_s1] sm:$0xff] %v480_v17 }
 0x122   : > { %490 = vst [vmem:[%s1401_s1 + $0x10] sm:$0xff] %v482_v18 }
 0x125   : > { %v470_v23 = vpop.f32.mrf.mxu2  ;;  %v475_v24 = vpop.f32.mrf.mxu3 }
 0x126   : > { %v484_v25 = vadd.f32 %v470_v23, %v351_v19  ;;  %v486_v26 = vadd.f32 %v475_v24, %v353_v20  ;;  %v462_v27 = vpop.f32.mrf.mxu0  ;;  %v467_v28 = vpop.f32.mrf.mxu1 }
 0x127   : > { %v481_v29 = vadd.f32 %v462_v27, %v348_v21  ;;  %v483_v30 = vadd.f32 %v467_v28, %v350_v22 }
 0x128   : > { %492 = vst [vmem:[%s1401_s1 + $0x20] sm:$0xff] %v484_v25 }
 0x129   : > { %494 = vst [vmem:[%s1401_s1 + $0x30] sm:$0xff] %v486_v26 }
 0x12a   : > { %489 = vst [vmem:[%s1401_s1 + $0x8] sm:$0xff] %v481_v29 }
 0x12b   : > { %491 = vst [vmem:[%s1401_s1 + $0x18] sm:$0xff] %v483_v30 }
 0x12d   : > { %v472_v33 = vpop.f32.mrf.mxu2  ;;  %v477_v34 = vpop.f32.mrf.mxu3 }
 0x12e   : > { %v485_v35 = vadd.f32 %v472_v33, %v352_v31  ;;  %v487_v36 = vadd.f32 %v477_v34, %v354_v32 }
 0x130   : > { %493 = vst [vmem:[%s1401_s1 + $0x28] sm:$0xff] %v485_v35 }
 0x131   : > { %495 = vst [vmem:[%s1401_s1 + $0x38] sm:$0xff] %v487_v36 }
 0x132 PF: > { %v499_v37 = vld [vmem:[%s1401_s1] sm:$0xff]  ;;  %s1562_s23 = sld [smem:[#allocation29_spill]]  ;;  %v500_v39 = vld [vmem:[%s1401_s1 + $0x8] sm:$0xff]  ;;  %v501_v40 = vld [vmem:[%s1401_s1 + $0x10] sm:$0xff]  ;;  %s745_s30 = sshll.u32 %s1113_s8, 6 }
 0x133   : > { %v502_v41 = vld [vmem:[%s1401_s1 + $0x18] sm:$0xff]  ;;  %v503_v46 = vld [vmem:[%s1401_s1 + $0x20] sm:$0xff]  ;;  %s1563_s18 = sld [smem:[#allocation30_spill]]  ;;  %s548_s8 = sshll.u32 %s1401_s1, 4  ;;  %s549_s8 = int_to_ptr.vmem [resolvable:$true] %s548_s8 }
 0x134   : > { %s536_s13 = scalar_lea.sflag [#allocation7], %s308_s7 }
 0x135   : > { %v505_v48 = vld [vmem:[%s1401_s1 + $0x30] sm:$0xff] }
 0x137   : > { %v504_v47 = vld [vmem:[%s1401_s1 + $0x28] sm:$0xff] }
 0x138   : > { %v900_v38 = vld [vmem:[%s1562_s23] ss:$0 sm:$0xff]  ;;  %v506_v51 = vld [vmem:[%s1401_s1 + $0x38] sm:$0xff] }
 0x139   : > { %v511_v42 = vadd.f32 %v900_v38, %v499_v37  ;;  %v512_v43 = vadd.f32 %v900_v38, %v500_v39  ;;  %v513_v44 = vadd.f32 %v900_v38, %v501_v40  ;;  %v514_v45 = vadd.f32 %v900_v38, %v502_v41  ;;  %s547_s20 = scalar_lea.hbm %s1563_s18, %s745_s30  ;;  %s1005_s9 = scalar_lea.hbm %s1563_s18, 128 }
 0x13a   : > { %v515_v49 = vadd.f32 %v900_v38, %v503_v46  ;;  %v516_v50 = vadd.f32 %v900_v38, %v504_v47  ;;  %v517_v55 = vadd.f32 %v900_v38, %v505_v48  ;;  %v518_v57 = vadd.f32 %v900_v38, %v506_v51  ;;  %s550_s5 = sshll.u32 %s547_s20, 4  ;;  %s551_s5 = int_to_ptr.hbm [resolvable:$true] %s550_s5 }
 0x13b   : > { %v519_v52 = vmax.f32 %v511_v42, 0.0  ;;  %v520_v53 = vmax.f32 %v512_v43, 0.0  ;;  %v521_v54 = vmax.f32 %v513_v44, 0.0  ;;  %v522_v56 = vmax.f32 %v514_v45, 0.0  ;;  %s999_s27 = sshra.s32 %s551_s5, 4  ;;  %s1000_s27 = int_to_ptr.hbm [resolvable:$true] %s999_s27 }
 0x13c   : > { %v523_v58 = vmax.f32 %v515_v49, 0.0  ;;  %v524_v59 = vmax.f32 %v516_v50, 0.0  ;;  %v525_v60 = vmax.f32 %v517_v55, 0.0  ;;  %v526_v61 = vmax.f32 %v518_v57, 0.0  ;;  %s1001_s19 = scalar_lea.hbm %s1000_s27, 64  ;;  %p1006_p4 = scmp.lt.s32.totalorder %s1000_s27, %s1563_s18 }
 0x13d   : > { %527 = vst [vmem:[%s1401_s1] sm:$0xff] %v519_v52  ;;  %p1002_p10 = scmp.ne.s32.totalorder %s1000_s27, %s1001_s19  ;;  %p1007_p5 = scmp.lt.s32.totalorder %s1005_s9, %s1001_s19 }
 0x13e   : > { %528 = vst [vmem:[%s1401_s1 + $0x8] sm:$0xff] %v520_v53 }
 0x13f   : > { %529 = vst [vmem:[%s1401_s1 + $0x10] sm:$0xff] %v521_v54  ;;  %p1003_p12 = pnand %p1002_p10, %p1270_p11  ;;  %p1008_p9 = por %p1007_p5, %p1006_p4 }
 0x140   : > { %530 = vst [vmem:[%s1401_s1 + $0x18] sm:$0xff] %v522_v56 }
 0x141   : > { %531 = vst [vmem:[%s1401_s1 + $0x20] sm:$0xff] %v523_v58  ;;  %p1004_p8 = pneg %p1003_p12 }
 0x142   : > { %532 = vst [vmem:[%s1401_s1 + $0x28] sm:$0xff] %v524_v59 }
 0x143   : > { %533 = vst [vmem:[%s1401_s1 + $0x30] sm:$0xff] %v525_v60  ;;  %p1009_p2 = pnand %p1008_p9, %p1004_p8 }
 0x144   : > { %534 = vst [vmem:[%s1401_s1 + $0x38] sm:$0xff] %v526_v61 }
 0x145   : > { %1012 = shalt.err (!%p1009_p2)
}
 0x146   : > { %s1128_s7 = smov 128   ;;  %s1129_s21 = smov 8  }
 0x147   : > { %778 = dma.vmem_to_hbm [thread:$0]  (%p1270_p11), %s549_s8, 1024, %s551_s5, %s536_s13, %s1128_s7, %s1128_s7, %s1129_s21  }
 0x148 PF: > { %s1565_s24 = sld [smem:[#allocation19_spill]]  ;;  %p1568_p1 = scmp.ge.s32.totalorder %s1121_s10, 2 }
 0x149   : > { %s1566_s1 = sld [smem:[#allocation27_spill]] }
 0x14e   : > { %s565_s12 = sand.u32 1, %s1565_s24  }
 0x14f   : > { %p1567_p0 = scmp.ne.s32.totalorder %s1566_s1, 0  ;;  %s566_s22 = scalar_lea.sflag [#allocation7], %s565_s12 }
 0x151   : > { %p792_p3 = pnand %p1568_p1, %p1567_p0 }
 0x153   : > { %p793_p13 = pneg %p792_p3 }
 0x155   : > { %1072 = dma.done.wait (%p793_p13), %s566_s22, 1024  }
 0x156   : > { %1074 = vsyncadd (%p793_p13), %s566_s22, 4294966272  ;;  %s37_s10 = sadd.s32 1, %s1121_s10   ;;  %s1569_s23 = sld [smem:[#allocation20_spill]] }
 0x157   : > { %p34_p6 = scmp.ge.s32.totalorder %s37_s10, 4   ;;  %s1570_s1 = sld [smem:[#allocation24_spill]] }
 0x158   : > { %s1571_s15 = sld [smem:[#allocation21_spill]]  ;;  %s1575_s0 = smov %s1081_s26 }
 0x159   : > { %s1572_s7 = sld [smem:[#allocation26_spill]]  ;;  %s1577_s27 = smov %s1093_s28 }
 0x15a   : > { %s1573_s8 = sld [smem:[#allocation22_spill]]  ;;  %s1578_s28 = smov %s1097_s29 }
 0x15b   : > { %s1574_s9 = sld [smem:[#allocation23_spill]]  ;;  %s1579_s29 = smov %s1339_s16 }
 0x15c   : > { %s1576_s26 = smov %s1569_s23  ;;  %s1580_s30 = smov %s1105_s6 }
 0x15d   :  { %36 = sbr.rel (!%p34_p6) target bundleno = 19 (0x13), region = 102 }
 0x15e   : > { %s1581_s6 = smov %s1571_s15 }
 0x162   :  { %572 = vsyncpa [#allocation6], 1 }
 0x163   :  { %574 = vsyncpa [#allocation6 + $0x1], 1 }
 0x164   :  { %575 = vsyncpa [#allocation9], 1 }
 0x165   :  { %577 = vsyncpa [#allocation9 + $0x1], 1 }
 0x166   :  { %578 = vsyncpa [#allocation7], 1 }
 0x167   :  { %580 = vsyncpa [#allocation7 + $0x1], 1 }

</bundles_post_ra>
